<compile_context>
chip_gen: v6e
topology: v6e:2x2x1
jax: 0.10.0
libtpu: 0.0.40
codegen_flags: <defaults>
</compile_context>

<pallas_src>
import functools

import jax
import jax.numpy as jnp
from jax.experimental import pallas as pl
from jax.experimental.pallas import tpu as pltpu


# ----------------------------- Pallas kernel -------------------------------

def _encoder_kernel(x_ref, w_ref, b_ref, wt_ref, bt_ref, o_ref, act_ref, *,
                    K, n_levels, C, has_trans):
    # x_ref  : (1, L, C)              input activation, channel-padded to C
    # w_ref  : (n_levels, K*C, 2*C)   bf16 padded conv weights, tap-major rows;
    #                                 value cols [0,C), gate cols [C,2C)
    # b_ref  : (n_levels, 1, 2*C)     f32 padded biases
    # wt_ref : (C, C)                 bf16 padded 1x1 trans weight (layer 0)
    # bt_ref : (1, C)                 f32 padded trans bias
    # o_ref  : (1, L, C)
    # act_ref: (Pmax + L, C) f32      VMEM-resident activation + causal pad
    L = o_ref.shape[1]
    Pmax = act_ref.shape[0] - L

    # Zero once: rows [0, Pmax) are the causal left-pad for every layer.
    act_ref[...] = jnp.zeros(act_ref.shape, jnp.float32)
    act_ref[pl.ds(Pmax, L), :] = x_ref[0].astype(jnp.float32)

    for i in range(n_levels):                      # static layer loop (fused)
        d = 2 ** i
        P = (K - 1) * d
        # K dilated taps, concatenated along channels -> single MXU matmul.
        taps = [act_ref[pl.ds(Pmax - P + t * d, L), :] for t in range(K)]
        xc = jnp.concatenate(taps, axis=-1).astype(jnp.bfloat16)   # (L, K*C)
        acc = jnp.dot(xc, w_ref[i], preferred_element_type=jnp.float32)
        acc = acc + b_ref[i]                                        # (L, 2C)

        # GLU: value lanes [0,C), gate lanes [C,2C) -> lane-aligned split.
        out = acc[:, :C] * jax.nn.sigmoid(acc[:, C:])               # (L, C)

        x_cur = act_ref[pl.ds(Pmax, L), :]          # residual = current act
        if i == 0 and has_trans:
            res = jnp.dot(x_cur.astype(jnp.bfloat16), wt_ref[...],
                          preferred_element_type=jnp.float32) + bt_ref[...]
        else:
            res = x_cur

        act_ref[pl.ds(Pmax, L), :] = out + res      # stays resident in VMEM

    o_ref[0] = act_ref[pl.ds(Pmax, L), :].astype(o_ref.dtype)


# ------------------------------ wrapper -------------------------------------

def _round_up(n, m):
    return ((n + m - 1) // m) * m


def encoder_forward(x_ncl, params, *, kernel_size):
    """Encoder.forward: x_ncl is PyTorch-layout (B, C, L)."""
    B, Cin, L = x_ncl.shape
    n_levels = len(params)
    K = kernel_size
    H = params[0]["w"].shape[2] // 2
    C = _round_up(max(Cin, H), 128)              # lane-aligned channel width
    Pmax = (K - 1) * (2 ** (n_levels - 1))       # largest causal pad

    x = jnp.transpose(x_ncl, (0, 2, 1))                      # (B, L, Cin)
    x = jnp.pad(x, ((0, 0), (0, 0), (0, C - Cin)))           # channel pad

    # Pack per-layer conv weights/biases into padded, stacked arrays.
    W = jnp.zeros((n_levels, K, C, 2 * C), jnp.float32)
    Bv = jnp.zeros((n_levels, 2 * C), jnp.float32)
    for i, layer in enumerate(params):
        w = layer["w"]                       # (K, cin, 2H)
        cin = w.shape[1]
        W = W.at[i, :, :cin, :H].set(w[:, :, :H])            # value half
        W = W.at[i, :, :cin, C:C + H].set(w[:, :, H:])       # gate half
        b = layer["b"].reshape(-1)
        Bv = Bv.at[i, :H].set(b[:H])
        Bv = Bv.at[i, C:C + H].set(b[H:])
    W = W.reshape(n_levels, K * C, 2 * C).astype(jnp.bfloat16)
    Bv = Bv.reshape(n_levels, 1, 2 * C)

    has_trans = params[0]["wt"] is not None
    wt = jnp.zeros((C, C), jnp.float32)
    bt = jnp.zeros((1, C), jnp.float32)
    if has_trans:
        cin0 = params[0]["wt"].shape[0]
        wt = wt.at[:cin0, :H].set(params[0]["wt"])
        bt = bt.at[:, :H].set(params[0]["bt"])
    wt = wt.astype(jnp.bfloat16)

    kernel = functools.partial(_encoder_kernel, K=K, n_levels=n_levels,
                               C=C, has_trans=has_trans)

    out = pl.pallas_call(
        kernel,
        out_shape=jax.ShapeDtypeStruct((B, L, C), x_ncl.dtype),
        grid=(B,),
        in_specs=[
            pl.BlockSpec((1, L, C), lambda b: (b, 0, 0)),
            pl.BlockSpec((n_levels, K * C, 2 * C), lambda b: (0, 0, 0)),
            pl.BlockSpec((n_levels, 1, 2 * C), lambda b: (0, 0, 0)),
            pl.BlockSpec((C, C), lambda b: (0, 0)),
            pl.BlockSpec((1, C), lambda b: (0, 0)),
        ],
        out_specs=pl.BlockSpec((1, L, C), lambda b: (b, 0, 0)),
        scratch_shapes=[pltpu.VMEM((Pmax + L, C), jnp.float32)],
        compiler_params=pltpu.CompilerParams(
            dimension_semantics=("parallel",)),
    )(x, W, Bv, wt, bt)

    return jnp.transpose(out[:, :, :H], (0, 2, 1))           # (B, H, L)


# --------------------------- parameter construction -------------------------

def _xavier_uniform(key, shape, fan_in, fan_out):
    bound = (6.0 / (fan_in + fan_out)) ** 0.5
    return jax.random.uniform(key, shape, jnp.float32, -bound, bound)


def init_encoder_params(key, input_size, hid_size, n_levels, kernel_size):
    params = []
    for i in range(n_levels):
        cin = input_size if i == 0 else hid_size
        cout2 = 2 * hid_size
        key, kv, kb, kt, ktb = jax.random.split(key, 5)

        # weight_norm: W = g * v / ||v||; default init g = ||v|| => W = v.
        v = _xavier_uniform(kv, (cout2, cin, kernel_size),
                            cin * kernel_size, cout2 * kernel_size)
        norm = jnp.sqrt(jnp.sum(v * v, axis=(1, 2), keepdims=True))
        w_eff = norm * v / norm                                # (2H, Cin, K)

        b_bound = 1.0 / (cin * kernel_size) ** 0.5
        b = jax.random.uniform(kb, (cout2,), jnp.float32, -b_bound, b_bound)

        layer = {
            "w": jnp.transpose(w_eff, (2, 1, 0)),              # (K, Cin, 2H)
            "b": b.reshape(1, cout2),
            "wt": None,
            "bt": None,
        }
        if cin != hid_size:  # 1x1 trans conv on the residual path
            wt = _xavier_uniform(kt, (hid_size, cin, 1), cin, hid_size)
            tb_bound = 1.0 / cin ** 0.5
            bt = jax.random.uniform(ktb, (hid_size,), jnp.float32,
                                    -tb_bound, tb_bound)
            layer["wt"] = jnp.transpose(wt[:, :, 0], (1, 0))   # (Cin, H)
            layer["bt"] = bt.reshape(1, hid_size)
        params.append(layer)
    return params


# ----------------------------- pure-JAX reference ---------------------------

def encoder_ref(x_ncl, params, *, kernel_size):
    x = jnp.transpose(x_ncl, (0, 2, 1))
    for i, layer in enumerate(params):
        d = 2 ** i
        P = (kernel_size - 1) * d
        B, L, _ = x.shape
        H = layer["w"].shape[2] // 2
        xpad = jnp.pad(x, ((0, 0), (P, 0), (0, 0)))
        y = jnp.zeros((B, L, 2 * H), jnp.float32)
        for t in range(kernel_size):
            y = y + jnp.einsum("blc,ch->blh",
                               xpad[:, t * d:t * d + L, :], layer["w"][t])
        y = y + layer["b"][None]
        out = y[..., :H] * jax.nn.sigmoid(y[..., H:])
        if layer["wt"] is not None:
            res = jnp.einsum("blc,ch->blh", x, layer["wt"]) + layer["bt"][None]
        else:
            res = x
        x = out + res
    return jnp.transpose(x, (0, 2, 1))


# ----------------------------------- main -----------------------------------

if __name__ == "__main__":
    # Encoder(input_size=4, hid_size=32, n_levels=2, kernel_size=3, model='Gen')
    B, Cin, L = 2, 4, 16
    hid_size, n_levels, kernel_size = 32, 2, 3

    key = jax.random.PRNGKey(0)
    kx, kp = jax.random.split(key)
    x = jax.random.normal(kx, (B, Cin, L), jnp.float32)   # PyTorch NCL layout
    params = init_encoder_params(kp, Cin, hid_size, n_levels, kernel_size)

    y = encoder_forward(x, params, kernel_size=kernel_size)
    y = jax.block_until_ready(y)

    assert y.shape == (B, hid_size, L), y.shape
    y_ref = encoder_ref(x, params, kernel_size=kernel_size)
    # bf16 matmul operands (f32 accumulate) in the kernel vs f32 reference.
    assert jnp.allclose(y, y_ref, atol=2e-2, rtol=2e-2), "mismatch vs reference"

    print("KERNEL_OK")
</pallas_src>

<mosaic_0001>
module attributes {stable_mosaic.version = 11 : i64} {
  func.func @_encoder_kernel(%arg0: i32, %arg1: memref<1x16x128xf32, #tpu.memory_space<vmem>>, %arg2: memref<2x384x256xbf16, #tpu.memory_space<vmem>>, %arg3: memref<2x1x256xf32, #tpu.memory_space<vmem>>, %arg4: memref<128x128xbf16, #tpu.memory_space<vmem>>, %arg5: memref<1x128xf32, #tpu.memory_space<vmem>>, %arg6: memref<1x16x128xf32, #tpu.memory_space<vmem>>, %arg7: memref<20x128xf32, #tpu.memory_space<vmem>>) attributes {dimension_semantics = [#tpu.dimension_semantics<parallel>], iteration_bounds = array<i64: 2>, scalar_prefetch = 0 : i64, scratch_operands = 1 : i64, tpu.core_type = #tpu.core_type<tc>, window_params = [{transform_indices = @transform_0, window_bounds = array<i64: 1, 16, 128>}, {pipeline_mode = #tpu.pipeline_mode<synchronous>, transform_indices = @transform_1, window_bounds = array<i64: 2, 384, 256>}, {pipeline_mode = #tpu.pipeline_mode<synchronous>, transform_indices = @transform_2, window_bounds = array<i64: 2, 1, 256>}, {pipeline_mode = #tpu.pipeline_mode<synchronous>, transform_indices = @transform_3, window_bounds = array<i64: 128, 128>}, {pipeline_mode = #tpu.pipeline_mode<synchronous>, transform_indices = @transform_4, window_bounds = array<i64: 1, 128>}, {transform_indices = @transform_5, window_bounds = array<i64: 1, 16, 128>}]} {
    %cst = arith.constant 0.000000e+00 : f32
    %0 = vector.broadcast %cst : f32 to vector<20x128xf32>
    %c0 = arith.constant 0 : index
    %c0_0 = arith.constant 0 : index
    %1 = vector.load %arg7[%c0, %c0_0] : memref<20x128xf32, #tpu.memory_space<vmem>>, vector<20x128xf32>
    tpu.vector_store %arg7[%c0, %c0_0], %0 {strides = array<i32>} : memref<20x128xf32, #tpu.memory_space<vmem>>, vector<20x128xf32>,
    %c0_1 = arith.constant 0 : index
    %c0_2 = arith.constant 0 : index
    %c0_3 = arith.constant 0 : index
    %2 = vector.load %arg1[%c0_1, %c0_2, %c0_3] : memref<1x16x128xf32, #tpu.memory_space<vmem>>, vector<1x16x128xf32>
    %3 = vector.shape_cast %2 : vector<1x16x128xf32> to vector<16x128xf32>
    %c4 = arith.constant 4 : index
    %c0_4 = arith.constant 0 : index
    %4 = vector.load %arg7[%c4, %c0_4] : memref<20x128xf32, #tpu.memory_space<vmem>>, vector<16x128xf32>
    tpu.vector_store %arg7[%c4, %c0_4], %3 {strides = array<i32>} : memref<20x128xf32, #tpu.memory_space<vmem>>, vector<16x128xf32>,
    %c2 = arith.constant 2 : index
    %c0_5 = arith.constant 0 : index
    %5 = vector.load %arg7[%c2, %c0_5] : memref<20x128xf32, #tpu.memory_space<vmem>>, vector<16x128xf32>
    %c3 = arith.constant 3 : index
    %c0_6 = arith.constant 0 : index
    %6 = vector.load %arg7[%c3, %c0_6] : memref<20x128xf32, #tpu.memory_space<vmem>>, vector<16x128xf32>
    %c4_7 = arith.constant 4 : index
    %c0_8 = arith.constant 0 : index
    %7 = vector.load %arg7[%c4_7, %c0_8] : memref<20x128xf32, #tpu.memory_space<vmem>>, vector<16x128xf32>
    %8 = tpu.concatenate %5, %6, %7 in 1 : vector<16x128xf32>, vector<16x128xf32>, vector<16x128xf32> -> vector<16x384xf32>
    %9 = arith.truncf %8 : vector<16x384xf32> to vector<16x384xbf16>
    %c0_9 = arith.constant 0 : index
    %c0_10 = arith.constant 0 : index
    %c0_11 = arith.constant 0 : index
    %10 = vector.load %arg2[%c0_9, %c0_10, %c0_11] : memref<2x384x256xbf16, #tpu.memory_space<vmem>>, vector<1x384x256xbf16>
    %11 = vector.shape_cast %10 : vector<1x384x256xbf16> to vector<384x256xbf16>
    %cst_12 = arith.constant dense<0.000000e+00> : vector<16x256xf32>
    %12 = tpu.matmul %9, %11, %cst_12 {dimension_numbers = #tpu.dot_dimension_numbers<[1], [0], [0], [1], [0, 0, 1, 1], [], []>} : vector<16x384xbf16>, vector<384x256xbf16>, vector<16x256xf32> -> vector<16x256xf32>
    %c0_13 = arith.constant 0 : index
    %c0_14 = arith.constant 0 : index
    %c0_15 = arith.constant 0 : index
    %13 = vector.load %arg3[%c0_13, %c0_14, %c0_15] : memref<2x1x256xf32, #tpu.memory_space<vmem>>, vector<1x1x256xf32>
    %14 = vector.shape_cast %13 : vector<1x1x256xf32> to vector<1x256xf32>
    %15 = vector.broadcast %14 : vector<1x256xf32> to vector<16x256xf32>
    %16 = arith.addf %12, %15 : vector<16x256xf32>
    %17 = vector.extract_strided_slice %16 {offsets = [0, 0], sizes = [16, 128], strides = [1, 1]} : vector<16x256xf32> to vector<16x128xf32>
    %18 = vector.extract_strided_slice %16 {offsets = [0, 128], sizes = [16, 128], strides = [1, 1]} : vector<16x256xf32> to vector<16x128xf32>
    %19 = arith.negf %18 : vector<16x128xf32>
    %20 = math.exp %19 : vector<16x128xf32>
    %cst_16 = arith.constant 1.000000e+00 : f32
    %21 = vector.broadcast %cst_16 : f32 to vector<16x128xf32>
    %22 = arith.addf %21, %20 : vector<16x128xf32>
    %23 = arith.divf %21, %22 : vector<16x128xf32>
    %24 = arith.mulf %17, %23 : vector<16x128xf32>
    %c4_17 = arith.constant 4 : index
    %c0_18 = arith.constant 0 : index
    %25 = vector.load %arg7[%c4_17, %c0_18] : memref<20x128xf32, #tpu.memory_space<vmem>>, vector<16x128xf32>
    %26 = arith.truncf %25 : vector<16x128xf32> to vector<16x128xbf16>
    %c0_19 = arith.constant 0 : index
    %c0_20 = arith.constant 0 : index
    %27 = vector.load %arg4[%c0_19, %c0_20] : memref<128x128xbf16, #tpu.memory_space<vmem>>, vector<128x128xbf16>
    %cst_21 = arith.constant dense<0.000000e+00> : vector<16x128xf32>
    %28 = tpu.matmul %26, %27, %cst_21 {dimension_numbers = #tpu.dot_dimension_numbers<[1], [0], [0], [1], [0, 0, 1, 1], [], []>} : vector<16x128xbf16>, vector<128x128xbf16>, vector<16x128xf32> -> vector<16x128xf32>
    %c0_22 = arith.constant 0 : index
    %c0_23 = arith.constant 0 : index
    %29 = vector.load %arg5[%c0_22, %c0_23] : memref<1x128xf32, #tpu.memory_space<vmem>>, vector<1x128xf32>
    %30 = vector.broadcast %29 : vector<1x128xf32> to vector<16x128xf32>
    %31 = arith.addf %28, %30 : vector<16x128xf32>
    %32 = arith.addf %24, %31 : vector<16x128xf32>
    %c4_24 = arith.constant 4 : index
    %c0_25 = arith.constant 0 : index
    %33 = vector.load %arg7[%c4_24, %c0_25] : memref<20x128xf32, #tpu.memory_space<vmem>>, vector<16x128xf32>
    tpu.vector_store %arg7[%c4_24, %c0_25], %32 {strides = array<i32>} : memref<20x128xf32, #tpu.memory_space<vmem>>, vector<16x128xf32>,
    %c0_26 = arith.constant 0 : index
    %c0_27 = arith.constant 0 : index
    %34 = vector.load %arg7[%c0_26, %c0_27] : memref<20x128xf32, #tpu.memory_space<vmem>>, vector<16x128xf32>
    %c2_28 = arith.constant 2 : index
    %c0_29 = arith.constant 0 : index
    %35 = vector.load %arg7[%c2_28, %c0_29] : memref<20x128xf32, #tpu.memory_space<vmem>>, vector<16x128xf32>
    %c4_30 = arith.constant 4 : index
    %c0_31 = arith.constant 0 : index
    %36 = vector.load %arg7[%c4_30, %c0_31] : memref<20x128xf32, #tpu.memory_space<vmem>>, vector<16x128xf32>
    %37 = tpu.concatenate %34, %35, %36 in 1 : vector<16x128xf32>, vector<16x128xf32>, vector<16x128xf32> -> vector<16x384xf32>
    %38 = arith.truncf %37 : vector<16x384xf32> to vector<16x384xbf16>
    %c1 = arith.constant 1 : index
    %c0_32 = arith.constant 0 : index
    %c0_33 = arith.constant 0 : index
    %39 = vector.load %arg2[%c1, %c0_32, %c0_33] : memref<2x384x256xbf16, #tpu.memory_space<vmem>>, vector<1x384x256xbf16>
    %40 = vector.shape_cast %39 : vector<1x384x256xbf16> to vector<384x256xbf16>
    %cst_34 = arith.constant dense<0.000000e+00> : vector<16x256xf32>
    %41 = tpu.matmul %38, %40, %cst_34 {dimension_numbers = #tpu.dot_dimension_numbers<[1], [0], [0], [1], [0, 0, 1, 1], [], []>} : vector<16x384xbf16>, vector<384x256xbf16>, vector<16x256xf32> -> vector<16x256xf32>
    %c1_35 = arith.constant 1 : index
    %c0_36 = arith.constant 0 : index
    %c0_37 = arith.constant 0 : index
    %42 = vector.load %arg3[%c1_35, %c0_36, %c0_37] : memref<2x1x256xf32, #tpu.memory_space<vmem>>, vector<1x1x256xf32>
    %43 = vector.shape_cast %42 : vector<1x1x256xf32> to vector<1x256xf32>
    %44 = vector.broadcast %43 : vector<1x256xf32> to vector<16x256xf32>
    %45 = arith.addf %41, %44 : vector<16x256xf32>
    %46 = vector.extract_strided_slice %45 {offsets = [0, 0], sizes = [16, 128], strides = [1, 1]} : vector<16x256xf32> to vector<16x128xf32>
    %47 = vector.extract_strided_slice %45 {offsets = [0, 128], sizes = [16, 128], strides = [1, 1]} : vector<16x256xf32> to vector<16x128xf32>
    %48 = arith.negf %47 : vector<16x128xf32>
    %49 = math.exp %48 : vector<16x128xf32>
    %cst_38 = arith.constant 1.000000e+00 : f32
    %50 = vector.broadcast %cst_38 : f32 to vector<16x128xf32>
    %51 = arith.addf %50, %49 : vector<16x128xf32>
    %52 = arith.divf %50, %51 : vector<16x128xf32>
    %53 = arith.mulf %46, %52 : vector<16x128xf32>
    %c4_39 = arith.constant 4 : index
    %c0_40 = arith.constant 0 : index
    %54 = vector.load %arg7[%c4_39, %c0_40] : memref<20x128xf32, #tpu.memory_space<vmem>>, vector<16x128xf32>
    %55 = arith.addf %53, %54 : vector<16x128xf32>
    %c4_41 = arith.constant 4 : index
    %c0_42 = arith.constant 0 : index
    %56 = vector.load %arg7[%c4_41, %c0_42] : memref<20x128xf32, #tpu.memory_space<vmem>>, vector<16x128xf32>
    tpu.vector_store %arg7[%c4_41, %c0_42], %55 {strides = array<i32>} : memref<20x128xf32, #tpu.memory_space<vmem>>, vector<16x128xf32>,
    %c4_43 = arith.constant 4 : index
    %c0_44 = arith.constant 0 : index
    %57 = vector.load %arg7[%c4_43, %c0_44] : memref<20x128xf32, #tpu.memory_space<vmem>>, vector<16x128xf32>
    %c0_45 = arith.constant 0 : index
    %c0_46 = arith.constant 0 : index
    %c0_47 = arith.constant 0 : index
    %58 = vector.load %arg6[%c0_45, %c0_46, %c0_47] : memref<1x16x128xf32, #tpu.memory_space<vmem>>, vector<1x16x128xf32>
    %59 = vector.shape_cast %58 : vector<1x16x128xf32> to vector<16x128xf32>
    %60 = vector.shape_cast %57 : vector<16x128xf32> to vector<1x16x128xf32>
    tpu.vector_store %arg6[%c0_45, %c0_46, %c0_47], %60 {strides = array<i32>} : memref<1x16x128xf32, #tpu.memory_space<vmem>>, vector<1x16x128xf32>,
    return
  }
  func.func @transform_0(%arg0: i32) -> (i32, i32, i32) {
    %c0_i32 = arith.constant 0 : i32
    %c0_i32_0 = arith.constant 0 : i32
    %c0_i32_1 = arith.constant 0 : i32
    return %arg0, %c0_i32, %c0_i32_0 : i32, i32, i32
  }
  func.func @transform_1(%arg0: i32) -> (i32, i32, i32) {
    %c0_i32 = arith.constant 0 : i32
    %c0_i32_0 = arith.constant 0 : i32
    %c0_i32_1 = arith.constant 0 : i32
    %c0_i32_2 = arith.constant 0 : i32
    return %c0_i32, %c0_i32_0, %c0_i32_1 : i32, i32, i32
  }
  func.func @transform_2(%arg0: i32) -> (i32, i32, i32) {
    %c0_i32 = arith.constant 0 : i32
    %c0_i32_0 = arith.constant 0 : i32
    %c0_i32_1 = arith.constant 0 : i32
    %c0_i32_2 = arith.constant 0 : i32
    return %c0_i32, %c0_i32_0, %c0_i32_1 : i32, i32, i32
  }
  func.func @transform_3(%arg0: i32) -> (i32, i32) {
    %c0_i32 = arith.constant 0 : i32
    %c0_i32_0 = arith.constant 0 : i32
    %c0_i32_1 = arith.constant 0 : i32
    return %c0_i32, %c0_i32_0 : i32, i32
  }
  func.func @transform_4(%arg0: i32) -> (i32, i32) {
    %c0_i32 = arith.constant 0 : i32
    %c0_i32_0 = arith.constant 0 : i32
    %c0_i32_1 = arith.constant 0 : i32
    return %c0_i32, %c0_i32_0 : i32, i32
  }
  func.func @transform_5(%arg0: i32) -> (i32, i32, i32) {
    %c0_i32 = arith.constant 0 : i32
    %c0_i32_0 = arith.constant 0 : i32
    %c0_i32_1 = arith.constant 0 : i32
    return %arg0, %c0_i32, %c0_i32_0 : i32, i32, i32
  }
}

</mosaic_0001>

<bundles_post_ra>
// kernel: tpu_custom_call.1
= control target key start
LH: loop header
LB: loop body
LE: loop exit
PB: predicated region body
PF: predicated region fallthrough
CT: control target
= control target key end

     0   :  { %10 = vsyncpa [#allocation4], 0  ;;  %s2232_s0 = inlined_call_operand.hbm [shape: f32[2,16,128], index: 0, kind: input, shape index: {}]   ;;  %s2233_s1 = inlined_call_operand.hbm [shape: bf16[2,384,256], index: 1, kind: input, shape index: {}]   ;;  %s2234_s2 = inlined_call_operand.hbm [shape: f32[2,1,256], index: 2, kind: input, shape index: {}]   ;;  %s2235_s3 = inlined_call_operand.hbm [shape: bf16[128,128], index: 3, kind: input, shape index: {}]   ;;  %s2236_s4 = inlined_call_operand.vmem [shape: f32[1,128], index: 4, kind: input, shape index: {}]   ;;  %s2237_s5 = inlined_call_operand.hbm [shape: f32[2,16,128], index: 5, kind: output, shape index: {}]  }
   0x1   :  { %12 = vsyncpa [#allocation4 + $0x1], 0 }
   0x2   :  { %13 = vsyncpa [#allocation7], 0 }
   0x3   :  { %14 = vsyncpa [#allocation10], 0 }
   0x4   :  { %15 = vsyncpa [#allocation5], 0 }
   0x5   :  { %17 = vsyncpa [#allocation5 + $0x1], 0  ;;  %s1997_s18 = smov 0   ;;  %s1999_s19 = smov 0  }
   0x6   :  { %s2001_s20 = smov 0   ;;  %s2003_s21 = smov 0  }
   0x7 LB: > { %s2018_s22 = sadd.s32 4294967295, %s1949_s21   ;;  %s1355_s23 = sadd.s32 4294967294, %s1949_s21   ;;  %s1949_s21 = sphi %s2003_s21, %s2262_s21   ;;  %s1945_s20 = sphi %s2001_s20, %s2261_s20   ;;  %s1941_s19 = sphi %s1999_s19, %s2260_s19   ;;  %s1937_s18 = sphi %s1997_s18, %s2259_s18  }
   0x8   : > { %p43_p0 = scmp.ne.s32.totalorder %s1941_s19, %s1937_s18  ;;  %p2238_p1 = scmp.eq.s32.totalorder %s2018_s22, 0 }
   0x9   : > { %p151_p2 = scmp.eq.s32.totalorder %s2018_s22, 1  ;;  %p157_p3 = scmp.eq.s32.totalorder %s1355_s23, 1 }
   0xa   : > { %p2027_p4 = por %p2238_p1, %p43_p0  ;;  %p1356_p5 = scmp.ge.s32.totalorder %s1949_s21, 1 }
   0xb   : > { %p2032_p6 = por %p157_p3, %p43_p0  ;;  %p164_p7 = scmp.lt.s32.totalorder %s1949_s21, 3 }
   0xc   : > { %s2243_s24 = scalar_select %p2027_p4, 1, 0 }
   0xd   : > { %s2244_s25 = scalar_select %p2032_p6, 1, 0 }
   0xe   : > { %p2037_p8 = pnand %p1356_p5, %p164_p7  ;;  %s1951_s27 = smov [#allocation6]  }
   0xf   : > { %s176_s28 = sshll.u32 %s1951_s27, 4  ;;  %s1952_s30 = smov [#allocation8]   ;;  %s177_s28 = int_to_ptr.vmem [resolvable:$true] %s176_s28 }
  0x10   : > { %s2245_s26 = scalar_select %p2037_p8, 1, 0 }
  0x11   : > { %p1531_p9 = pneg %p2037_p8  ;;  %s189_s6 = sshll.u32 %s1952_s30, 4  ;;  %s190_s6 = int_to_ptr.vmem [resolvable:$true] %s189_s6 }
  0x12   : > { %s1782_s7 = scalar_lea.vmem %s177_s28, 12288  ;;  %p1790_p5 = scmp.lt.s32.totalorder %s177_s28, %s177_s28 }
  0x13   : > { %p2046_p11 = pnand %p1531_p9, %p2238_p1  ;;  %p1783_p13 = scmp.ne.s32.totalorder %s177_s28, %s1782_s7 }
  0x14   : > { %p1791_p7 = scmp.lt.s32.totalorder %s1782_s7, %s1782_s7 }
  0x15   : > { %p1773_p12 = pneg %p2046_p11 }
  0x16   : > { %p1792_p10 = por %p1791_p7, %p1790_p5 }
  0x17   : > { %p1785_p0 = pnand %p1783_p13, %p1773_p12 }
  0x19   : > { %p1786_p3 = pneg %p1785_p0 }
  0x1b   : > { %p1793_p9 = pnand %p1792_p10, %p1786_p3 }
  0x1d   : > { %1796 = shalt.err (!%p1793_p9)
}
  0x1e   : > { %s2239_s8 = smov 128   ;;  %s1954_s9 = smov 8  }
  0x1f   : > { %1534 = dma.hbm_to_vmem [thread:$0]  (!%p2046_p11), %s2233_s1, 12288, %s177_s28, [#allocation7], %s2239_s8, %s2239_s8, %s1954_s9  }
  0x20   : > { %s1808_s12 = scalar_lea.vmem %s190_s6, 64  ;;  %p1816_p10 = scmp.lt.s32.totalorder %s190_s6, %s190_s6 }
  0x21   : > { %p1809_p13 = scmp.ne.s32.totalorder %s190_s6, %s1808_s12  ;;  %p1817_p3 = scmp.lt.s32.totalorder %s1808_s12, %s1808_s12 }
  0x23   : > { %p1811_p0 = pnand %p1809_p13, %p1773_p12  ;;  %p1818_p7 = por %p1817_p3, %p1816_p10 }
  0x25   : > { %p1812_p5 = pneg %p1811_p0 }
  0x27   : > { %p1819_p9 = pnand %p1818_p7, %p1812_p5 }
  0x29   : > { %1822 = shalt.err (!%p1819_p9)
}
  0x2a   : > { %s1955_s13 = smov 32   ;;  %s1956_s14 = smov 2  }
  0x2b   : > { %1537 = dma.hbm_to_vmem [thread:$0]  (!%p2046_p11), %s2234_s2, 64, %s190_s6, [#allocation7], %s1955_s13, %s1955_s13, %s1956_s14  }
  0x2c   : > { %s1957_s17 = smov [#allocation9]  }
  0x2d   : > { %s202_s23 = sshll.u32 %s1957_s17, 4  ;;  %s203_s23 = int_to_ptr.vmem [resolvable:$true] %s202_s23 }
  0x2e   : > { %s1834_s27 = scalar_lea.vmem %s203_s23, 1024  ;;  %p1842_p5 = scmp.lt.s32.totalorder %s203_s23, %s203_s23 }
  0x2f   : > { %p1835_p13 = scmp.ne.s32.totalorder %s203_s23, %s1834_s27  ;;  %p1843_p3 = scmp.lt.s32.totalorder %s1834_s27, %s1834_s27 }
  0x31   : > { %p1837_p0 = pnand %p1835_p13, %p1773_p12  ;;  %p1844_p7 = por %p1843_p3, %p1842_p5 }
  0x33   : > { %p1838_p10 = pneg %p1837_p0 }
  0x35   : > { %p1845_p9 = pnand %p1844_p7, %p1838_p10 }
  0x37   : > { %1848 = shalt.err (!%p1845_p9)
}
  0x38   : > { %s1958_s28 = smov 64   ;;  %s1959_s30 = smov 4  }
  0x39   : > { %1540 = dma.hbm_to_vmem [thread:$0]  (!%p2046_p11), %s2235_s3, 1024, %s203_s23, [#allocation10], %s1958_s28, %s1958_s28, %s1959_s30  }
  0x3a   : > { %s2080_s10 = sadd.s32 1, %s1949_s21   ;;  %s30_s12 = sadd.s32 1, %s1945_s20 }
  0x3b   : > { %s27_s11 = ssub.s32 %s1949_s21, %s2080_s10  ;;  %p37_p13 = scmp.ne.s32.totalorder %s1945_s20, %s1941_s19 }
  0x3c   : > { %p28_p12 = scmp.eq.s32.totalorder %s27_s11, 0  ;;  %p38_p0 = scmp.eq.s32.totalorder %s1949_s21, 0 }
  0x3d   : > { %p1552_p10 = scmp.lt.s32.totalorder %s1949_s21, 2  ;;  %p2094_p3 = por %p151_p2, %p37_p13 }
  0x3e   : > { %s2090_s13 = scalar_select %p28_p12, %s1945_s20, %s30_s12  }
  0x3f   : > { %p39_p5 = por %p38_p0, %p37_p13  ;;  %s219_s29 = sand.u32 1, %s1945_s20  }
  0x40   : > { %s2247_s14 = scalar_select %p2094_p3, 1, 0 }
  0x41   : > { %s1484_s15 = sshll.u32 %s1949_s21, 8  ;;  %s1361_s16 = sshll.u32 %s219_s29, 4 }
  0x42   : > { %s2103_s27 = scalar_lea.hbm %s2232_s0, %s1484_s15  ;;  %s223_s28 = scalar_lea.vmem [#allocation3], %s1361_s16 }
  0x43   : > { %s230_s30 = sshll.u32 %s223_s28, 4  ;;  %p2105_p11 = pnand %p1552_p10, %p39_p5  ;;  %s2109_s30 = int_to_ptr.vmem [resolvable:$true] %s230_s30 }
  0x44   : > { %s2111_s7 = scalar_lea.sflag [#allocation4], %s219_s29  ;;  %s1849_s11 = scalar_lea.hbm %s2103_s27, 256 }
  0x45   : > { %p1850_p2 = scmp.ne.s32.totalorder %s2103_s27, %s1849_s11  ;;  %p1851_p7 = pneg %p2105_p11 }
  0x46   : > { %s1854_s16 = scalar_lea.hbm %s2232_s0, 512  ;;  %p1855_p13 = scmp.lt.s32.totalorder %s2103_s27, %s2232_s0 }
  0x47   : > { %p1852_p9 = pnand %p1851_p7, %p1850_p2  ;;  %p1856_p0 = scmp.lt.s32.totalorder %s1854_s16, %s1849_s11 }
  0x49   : > { %p1853_p12 = pneg %p1852_p9  ;;  %p1857_p10 = por %p1856_p0, %p1855_p13 }
  0x4b   : > { %p1858_p5 = pnand %p1857_p10, %p1853_p12 }
  0x4d   : > { %1861 = shalt.err (!%p1858_p5)
}
  0x4e   : > { %s1862_s29 = scalar_lea.vmem %s2109_s30, 256  ;;  %s1960_s28 = smov [#allocation3]  }
  0x4f   : > { %p1863_p1 = scmp.ne.s32.totalorder %s2109_s30, %s1862_s29  ;;  %s1867_s8 = sshll.u32 %s1960_s28, 4  ;;  %s1868_s8 = int_to_ptr.vmem [resolvable:$false] %s1867_s8 }
  0x50   : > { %s1869_s12 = scalar_lea.vmem %s1868_s8, 512  ;;  %p1870_p9 = scmp.lt.s32.totalorder %s2109_s30, %s1868_s8 }
  0x51   : > { %p1865_p6 = pnand %p1863_p1, %p1851_p7  ;;  %p1871_p3 = scmp.lt.s32.totalorder %s1869_s12, %s1862_s29 }
  0x53   : > { %p1866_p2 = pneg %p1865_p6  ;;  %p1872_p4 = por %p1871_p3, %p1870_p9 }
  0x55   : > { %p1873_p8 = pnand %p1872_p4, %p1866_p2 }
  0x57   : > { %1876 = shalt.err (!%p1873_p8)
}
  0x58   : > { %s2249_s11 = smov 128   ;;  %p2250_p1 = scmp.ne.s32.totalorder %s2245_s26, 0 }
  0x59   : > { %1544 = dma.hbm_to_vmem [thread:$0]  (!%p2105_p11), %s2103_s27, 256, %s2109_s30, %s2111_s7, %s2249_s11, %s2249_s11, %s1954_s9  }
  0x5a   : > { %242 = sbr.rel (%p2250_p1) target bundleno = 670 (0x29e), region = 40  ;;  %s2138_s15 = sand.u32 (!%p2250_p1), 1, %s1941_s19  }
  0x5b   : > { %s1365_s8 = sshll.u32 (!%p2250_p1), %s2138_s15, 4  ;;  %s245_s16 = scalar_lea.sflag (!%p2250_p1), [#allocation4], %s2138_s15 }
  0x5c   : > { %s2144_s6 = scalar_lea.vmem (!%p2250_p1), [#allocation3], %s1365_s8  ;;  %p2251_p4 = scmp.ne.s32.totalorder (!%p2250_p1), %s2243_s24, 0 }
  0x5f   : > { %1920 = dma.done.wait (%p2251_p4), %s245_s16, 256  }
  0x60   : > { %1922 = vsyncadd (%p2251_p4), %s245_s16, 4294967040  ;;  %p2252_p6 = scmp.eq.s32.totalorder %s2018_s22, 0 }
  0x62   : > { %1924 = dma.done.wait (%p2252_p6), [#allocation7], 12352   ;;  %p2253_p8 = pmov %p2252_p6 }
  0x63   : > { %p2254_p3 = pmov %p2252_p6 }
  0x64   : > { %1926 = vsyncadd (%p2253_p8), [#allocation7], 4294954944 }
  0x65   : > { %1928 = dma.done.wait (%p2254_p3), [#allocation10], 1024   ;;  %p2255_p11 = pmov %p2254_p3 }
  0x66   : > { %v1961_v0 = vmov 0   ;;  %v1962_v1 = vmov 0.0   ;;  %v1603_v2 = vld [vmem:[#allocation6 + $0x74] ss:$8 sps:$4 sm:$0xff]   ;;  %v1605_v3 = vld [vmem:[#allocation6 + $0x70] ss:$8 sps:$4 sm:$0xff]  }
  0x67   : > { %1930 = vsyncadd (%p2255_p11), [#allocation10], 4294966272  ;;  %679 = vmatprep.mubr.bf16.mxu1 %v1961_v0  ;;  %288 = vst [vmem:[#allocation2] sm:$0xff] %v1962_v1  ;;  %604 = vmatprep.subr.bf16.mxu0 %v1603_v2  ;;  %v1606_v4 = vld [vmem:[#allocation6 + $0x64] ss:$8 sps:$4 sm:$0xff]   ;;  %v1675_v48 = vld [vmem:[#allocation9 + $0x38] sm:$0xff]  }
  0x68   : > { %289 = vst [vmem:[#allocation2 + $0x8] sm:$0xff] %v1962_v1  ;;  %290 = vst [vmem:[#allocation2 + $0x10] sm:$0xf] %v1962_v1  ;;  %605 = vmatpush1.bf16.msra.mxu0 %v1605_v3  ;;  %v1608_v5 = vld [vmem:[#allocation6 + $0x60] ss:$8 sps:$4 sm:$0xff]   ;;  %v1676_v50 = vld [vmem:[#allocation9 + $0x30] sm:$0xff]  }
  0x69   : > { %606 = vmatprep.subr.bf16.mxu0 %v1606_v4  ;;  %v1609_v6 = vld [vmem:[#allocation6 + $0x54] ss:$8 sps:$4 sm:$0xff]   ;;  %v1611_v7 = vld [vmem:[#allocation6 + $0x50] ss:$8 sps:$4 sm:$0xff]   ;;  %v1612_v8 = vld [vmem:[#allocation6 + $0x44] ss:$8 sps:$4 sm:$0xff]  }
  0x6a   : > { %v1614_v9 = vld [vmem:[#allocation6 + $0x40] ss:$8 sps:$4 sm:$0xff]   ;;  %v1626_v10 = vld [vmem:[#allocation6 + $0x174] ss:$8 sps:$4 sm:$0xff]   ;;  %v1629_v11 = vld [vmem:[#allocation6 + $0x170] ss:$8 sps:$4 sm:$0xff]  }
  0x6b   : > { %v1615_v12 = vld [vmem:[#allocation6 + $0x34] ss:$8 sps:$4 sm:$0xff]   ;;  %647 = vmatprep.subr.bf16.mxu1 %v1626_v10  ;;  %v1632_v13 = vld [vmem:[#allocation6 + $0x164] ss:$8 sps:$4 sm:$0xff]   ;;  %v1635_v14 = vld [vmem:[#allocation6 + $0x160] ss:$8 sps:$4 sm:$0xff]  }
  0x6c   : > { %607 = vmatpush1.bf16.msra.mxu0 %v1608_v5  ;;  %648 = vmatpush1.bf16.msra.mxu1 %v1629_v11  ;;  %v1617_v15 = vld [vmem:[#allocation6 + $0x30] ss:$8 sps:$4 sm:$0xff]   ;;  %v1618_v16 = vld [vmem:[#allocation6 + $0x24] ss:$8 sps:$4 sm:$0xff]   ;;  %v1638_v17 = vld [vmem:[#allocation6 + $0x154] ss:$8 sps:$4 sm:$0xff]  }
  0x6d   : > { %608 = vmatprep.subr.bf16.mxu0 %v1609_v6  ;;  %649 = vmatprep.subr.bf16.mxu1 %v1632_v13  ;;  %v1641_v18 = vld [vmem:[#allocation6 + $0x150] ss:$8 sps:$4 sm:$0xff]   ;;  %v1620_v19 = vld [vmem:[#allocation6 + $0x20] ss:$8 sps:$4 sm:$0xff]   ;;  %v1644_v20 = vld [vmem:[#allocation6 + $0x144] ss:$8 sps:$4 sm:$0xff]  }
  0x6e   : > { %v1621_v21 = vld [vmem:[#allocation6 + $0x14] ss:$8 sps:$4 sm:$0xff]   ;;  %v1623_v22 = vld [vmem:[#allocation6 + $0x10] ss:$8 sps:$4 sm:$0xff]   ;;  %v1647_v23 = vld [vmem:[#allocation6 + $0x140] ss:$8 sps:$4 sm:$0xff]  }
  0x6f   : > { %v1650_v24 = vld [vmem:[#allocation6 + $0x134] ss:$8 sps:$4 sm:$0xff]   ;;  %v1624_v25 = vld [vmem:[#allocation6 + $0x4] ss:$8 sps:$4 sm:$0xff]   ;;  %v1653_v26 = vld [vmem:[#allocation6 + $0x130] ss:$8 sps:$4 sm:$0xff]  }
  0x70   : > { %609 = vmatpush1.bf16.msra.mxu0 %v1611_v7  ;;  %650 = vmatpush1.bf16.msra.mxu1 %v1635_v14  ;;  %v1628_v27 = vld [vmem:[#allocation6] ss:$8 sps:$4 sm:$0xff]   ;;  %v1656_v28 = vld [vmem:[#allocation6 + $0x124] ss:$8 sps:$4 sm:$0xff]   ;;  %v1630_v29 = vld [vmem:[#allocation6 + $0xf4] ss:$8 sps:$4 sm:$0xff]  }
  0x71   : > { %610 = vmatprep.subr.bf16.mxu0 %v1612_v8  ;;  %651 = vmatprep.subr.bf16.mxu1 %v1638_v17  ;;  %v1634_v30 = vld [vmem:[#allocation6 + $0xf0] ss:$8 sps:$4 sm:$0xff]   ;;  %v1659_v31 = vld [vmem:[#allocation6 + $0x120] ss:$8 sps:$4 sm:$0xff]   ;;  %v1662_v32 = vld [vmem:[#allocation6 + $0x114] ss:$8 sps:$4 sm:$0xff]  }
  0x72   : > { %v291_v33 = vld [vmem:[%s2144_s6] sm:$0xff]  ;;  %v292_v35 = vld [vmem:[%s2144_s6 + $0x8] sm:$0xff]  ;;  %vm1963_vm0 = vmmov 0   ;;  %s1485_s9 = sshll.u32 %s2018_s22, 8  ;;  %s286_s27 = scalar_lea.vmem [#allocation11], %s1365_s8 }
  0x73   : > { %v1636_v34 = vld [vmem:[#allocation6 + $0xe4] ss:$8 sps:$4 sm:$0xff]   ;;  %293 = vst [vmem:[#allocation2 + $0x4] sm:$0xff] %v291_v33  ;;  %v1640_v36 = vld [vmem:[#allocation6 + $0xe0] ss:$8 sps:$4 sm:$0xff]   ;;  %294 = vst [vmem:[#allocation2 + $0xc] sm:$0xff] %v292_v35  ;;  %v303_v46 = vpack.c.bf16 %v292_v35, %v291_v33  ;;  %s2187_s23 = scalar_lea.hbm %s2237_s5, %s1485_s9 }
  0x74   : > { %611 = vmatpush1.bf16.msra.mxu0 %v1614_v9  ;;  %652 = vmatpush1.bf16.msra.mxu1 %v1641_v18  ;;  %v1665_v37 = vld [vmem:[#allocation6 + $0x110] ss:$8 sps:$4 sm:$0xff]   ;;  %v1668_v38 = vld [vmem:[#allocation6 + $0x104] ss:$8 sps:$4 sm:$0xff]   ;;  %v1642_v39 = vld [vmem:[#allocation6 + $0xd4] ss:$8 sps:$4 sm:$0xff]  }
  0x75   : > { %612 = vmatprep.subr.bf16.mxu0 %v1615_v12  ;;  %653 = vmatprep.subr.bf16.mxu1 %v1644_v20  ;;  %v1671_v40 = vld [vmem:[#allocation6 + $0x100] ss:$8 sps:$4 sm:$0xff]   ;;  %v1646_v41 = vld [vmem:[#allocation6 + $0xd0] ss:$8 sps:$4 sm:$0xff]   ;;  %v1648_v43 = vld [vmem:[#allocation6 + $0xc4] ss:$8 sps:$4 sm:$0xff]  }
  0x76   : > { %v1652_v45 = vld [vmem:[#allocation6 + $0xc0] ss:$8 sps:$4 sm:$0xff]   ;;  %v1654_v49 = vld [vmem:[#allocation6 + $0xb4] ss:$8 sps:$4 sm:$0xff]   ;;  %v1658_v51 = vld [vmem:[#allocation6 + $0xb0] ss:$8 sps:$4 sm:$0xff]  }
  0x77   : > { %v1660_v52 = vld [vmem:[#allocation6 + $0xa4] ss:$8 sps:$4 sm:$0xff]   ;;  %v1664_v54 = vld [vmem:[#allocation6 + $0xa0] ss:$8 sps:$4 sm:$0xff]   ;;  %v1666_v55 = vld [vmem:[#allocation6 + $0x94] ss:$8 sps:$4 sm:$0xff]  }
  0x78   : > { %613 = vmatpush1.bf16.msra.mxu0 %v1617_v15  ;;  %654 = vmatpush1.bf16.msra.mxu1 %v1647_v23  ;;  %v1677_v53 = vld [vmem:[#allocation9 + $0x28] sm:$0xff]   ;;  %v1678_v56 = vld [vmem:[#allocation9 + $0x20] sm:$0xff]   ;;  %v1679_v59 = vld [vmem:[#allocation9 + $0x18] sm:$0xff]   ;;  %s1253_s30 = sshll.u32 %s286_s27, 4  ;;  %s1240_s22 = scalar_lea.sflag [#allocation5], %s2138_s15  ;;  %s2189_s30 = int_to_ptr.vmem [resolvable:$true] %s1253_s30 }
  0x79   : > { %614 = vmatprep.subr.bf16.mxu0 %v1618_v16  ;;  %655 = vmatprep.subr.bf16.mxu1 %v1650_v24  ;;  %v1670_v57 = vld [vmem:[#allocation6 + $0x90] ss:$8 sps:$4 sm:$0xff]   ;;  %v1672_v58 = vld [vmem:[#allocation6 + $0x84] ss:$8 sps:$4 sm:$0xff]   ;;  %v1674_v60 = vld [vmem:[#allocation6 + $0x80] ss:$8 sps:$4 sm:$0xff]  }
  0x7a   : > { %v297_v42 = vld [vmem:[#allocation2 + $0x3] sm:$0xff]  ;;  %v298_v44 = vld [vmem:[#allocation2 + $0xb] sm:$0xff]  ;;  %s1877_s29 = scalar_lea.vmem %s2189_s30, 256  ;;  %p2256_p12 = scmp.ne.s32.totalorder %s2247_s14, 0 }
  0x7b   : > { %v302_v47 = vpack.c.bf16 %v298_v44, %v297_v42  ;;  %v295_v61 = vld [vmem:[#allocation2 + $0x2] sm:$0xff]  ;;  %v296_v62 = vld [vmem:[#allocation2 + $0xa] sm:$0xff]  ;;  %p1878_p7 = scmp.ne.s32.totalorder %s2189_s30, %s1877_s29  ;;  %s1964_s28 = smov [#allocation11]  }
  0x7c   : > { %615 = vmatpush1.bf16.msra.mxu0 %v1620_v19  ;;  %656 = vmatpush1.bf16.msra.mxu1 %v1653_v26  ;;  %v1685_v63 = vld [vmem:[#allocation6 + $0x1f4] ss:$8 sps:$4 sm:$0xff]   ;;  %v301_v2 = vpack.c.bf16 %v296_v62, %v295_v61  ;;  %v1683_v4 = vld [vmem:[#allocation6 + $0x1f0] ss:$8 sps:$4 sm:$0xff]   ;;  %v1682_v6 = vld [vmem:[#allocation9] sm:$0xff]   ;;  %s1881_s12 = sshll.u32 %s1964_s28, 4  ;;  %s1882_s12 = int_to_ptr.vmem [resolvable:$false] %s1881_s12 }
  0x7d   : > { %616 = vmatprep.subr.bf16.mxu0 %v1621_v21  ;;  %657 = vmatprep.subr.bf16.mxu1 %v1656_v28  ;;  %v1680_v3 = vld [vmem:[#allocation9 + $0x10] sm:$0xff]   ;;  %v1681_v5 = vld [vmem:[#allocation9 + $0x8] sm:$0xff]   ;;  %v1686_v7 = vld [vmem:[#allocation6 + $0x1e0] ss:$8 sps:$4 sm:$0xff]   ;;  %p1879_p13 = pnand %p1878_p7, %p2256_p12  ;;  %s1883_s11 = scalar_lea.vmem %s1882_s12, 512 }
  0x7e   : > { %636 = vmatprep.mubr.bf16.mxu0 %v302_v47  ;;  %v1688_v8 = vld [vmem:[#allocation6 + $0x1e4] ss:$8 sps:$4 sm:$0xff]   ;;  %v1691_v9 = vld [vmem:[#allocation6 + $0x1d4] ss:$8 sps:$4 sm:$0xff]   ;;  %v1689_v10 = vld [vmem:[#allocation6 + $0x1d0] ss:$8 sps:$4 sm:$0xff]   ;;  %p1884_p10 = scmp.lt.s32.totalorder %s2189_s30, %s1882_s12  ;;  %p1885_p5 = scmp.lt.s32.totalorder %s1883_s11, %s1877_s29 }
  0x7f   : > { %v1694_v11 = vld [vmem:[#allocation6 + $0x1c4] ss:$8 sps:$4 sm:$0xff]   ;;  %v1692_v12 = vld [vmem:[#allocation6 + $0x1c0] ss:$8 sps:$4 sm:$0xff]   ;;  %v1697_v13 = vld [vmem:[#allocation6 + $0x1b4] ss:$8 sps:$4 sm:$0xff]   ;;  %p1880_p0 = pneg %p1879_p13 }
  0x80   : > { %617 = vmatpush1.bf16.msra.mxu0 %v1623_v22  ;;  %658 = vmatpush1.bf16.msra.mxu1 %v1659_v31  ;;  %v1695_v14 = vld [vmem:[#allocation6 + $0x1b0] ss:$8 sps:$4 sm:$0xff]   ;;  %v1698_v15 = vld [vmem:[#allocation6 + $0x1a0] ss:$8 sps:$4 sm:$0xff]   ;;  %v1703_v16 = vld [vmem:[#allocation6 + $0x194] ss:$8 sps:$4 sm:$0xff]   ;;  %p1886_p2 = por %p1885_p5, %p1884_p10 }
  0x81   : > { %618 = vmatprep.subr.bf16.mxu0 %v1624_v25  ;;  %659 = vmatprep.subr.bf16.mxu1 %v1662_v32  ;;  %v1707_v17 = vld [vmem:[#allocation6 + $0x2f0] ss:$8 sps:$4 sm:$0xff]   ;;  %v1715_v19 = vld [vmem:[#allocation6 + $0x2e4] ss:$8 sps:$4 sm:$0xff]   ;;  %v1713_v21 = vld [vmem:[#allocation6 + $0x2e0] ss:$8 sps:$4 sm:$0xff]  }
  0x82   : > { %v1701_v18 = vld [vmem:[#allocation6 + $0x190] ss:$8 sps:$4 sm:$0xff]   ;;  %v1706_v20 = vld [vmem:[#allocation6 + $0x184] ss:$8 sps:$4 sm:$0xff]   ;;  %v1704_v22 = vld [vmem:[#allocation6 + $0x180] ss:$8 sps:$4 sm:$0xff]   ;;  %p1887_p9 = pnand %p1886_p2, %p1880_p0 }
  0x83   : > { %v1721_v23 = vld [vmem:[#allocation6 + $0x2d4] ss:$8 sps:$4 sm:$0xff]   ;;  %v1719_v25 = vld [vmem:[#allocation6 + $0x2d0] ss:$8 sps:$4 sm:$0xff]   ;;  %v1718_v28 = vld [vmem:[#allocation6 + $0x264] ss:$8 sps:$4 sm:$0xff]  }
  0x84   : > { %619 = vmatpush1.bf16.msra.mxu0 %v1628_v27  ;;  %660 = vmatpush1.bf16.msra.mxu1 %v1665_v37  ;;  %v1712_v24 = vld [vmem:[#allocation6 + $0x274] ss:$8 sps:$4 sm:$0xff]   ;;  %v1710_v26 = vld [vmem:[#allocation6 + $0x270] ss:$8 sps:$4 sm:$0xff]   ;;  %v1727_v27 = vld [vmem:[#allocation6 + $0x2c4] ss:$8 sps:$4 sm:$0xff]  }
  0x85   : > { %620 = vmatprep.subr.bf16.mxu0 %v1630_v29  ;;  %661 = vmatprep.subr.bf16.mxu1 %v1668_v38  ;;  %v1725_v29 = vld [vmem:[#allocation6 + $0x2c0] ss:$8 sps:$4 sm:$0xff]   ;;  %v1733_v31 = vld [vmem:[#allocation6 + $0x2b4] ss:$8 sps:$4 sm:$0xff]   ;;  %v1731_v33 = vld [vmem:[#allocation6 + $0x2b0] ss:$8 sps:$4 sm:$0xff]  }
  0x86   : > { %v1724_v32 = vld [vmem:[#allocation6 + $0x254] ss:$8 sps:$4 sm:$0xff]   ;;  %v1739_v35 = vld [vmem:[#allocation6 + $0x2a4] ss:$8 sps:$4 sm:$0xff]   ;;  %v1737_v37 = vld [vmem:[#allocation6 + $0x2a0] ss:$8 sps:$4 sm:$0xff]  }
  0x87   : > { %v1728_v38 = vld [vmem:[#allocation6 + $0x240] ss:$8 sps:$4 sm:$0xff]   ;;  %v1734_v42 = vld [vmem:[#allocation6 + $0x230] ss:$8 sps:$4 sm:$0xff]   ;;  %v1742_v44 = vld [vmem:[#allocation6 + $0x224] ss:$8 sps:$4 sm:$0xff]  }
  0x88   : > { %621 = vmatpush2.bf16.msra.mxu0 %v1634_v30  ;;  %662 = vmatpush1.bf16.msra.mxu1 %v1671_v40  ;;  %v1716_v30 = vld [vmem:[#allocation6 + $0x260] ss:$8 sps:$4 sm:$0xff]   ;;  %v1736_v40 = vld [vmem:[#allocation6 + $0x234] ss:$8 sps:$4 sm:$0xff]   ;;  %v1746_v47 = vld [vmem:[#allocation6 + $0x210] ss:$8 sps:$4 sm:$0xff]  }
  0x89   : > { %622 = vmatprep.subr.bf16.mxu0 %v1636_v34  ;;  %1495 = vmatprep.subr.bf16.mxu1 %v1962_v1  ;;  %v1722_v34 = vld [vmem:[#allocation6 + $0x250] ss:$8 sps:$4 sm:$0xff]  }
  0x8b   : > { %680 = vmatmul.mubr.bf16.vlgmr.msra.gmra.mxu1 %v303_v46 }
  0x8c   : > { %623 = vmatpush2.bf16.msra.mxu0 %v1640_v36  ;;  %1496 = vmatpush3.bf16.msra.mxu1 %v1675_v48  ;;  %v1730_v36 = vld [vmem:[#allocation6 + $0x244] ss:$8 sps:$4 sm:$0xff]   ;;  %v1748_v48 = vld [vmem:[#allocation6 + $0x214] ss:$8 sps:$4 sm:$0xff]  }
  0x8d   : > { %624 = vmatprep.subr.bf16.mxu0 %v1642_v39  ;;  %1511 = vmatprep.mubr.msk.bf16.mxu1 %vm1963_vm0, %v1962_v1  ;;  %v1745_v39 = vld [vmem:[#allocation6 + $0x294] ss:$8 sps:$4 sm:$0xff]  }
  0x8e   : > { %1497 = vmatprep.subr.bf16.mxu1 %v1962_v1 }
  0x90   : > { %625 = vmatpush2.bf16.msra.mxu0 %v1646_v41  ;;  %1498 = vmatpush3.bf16.msra.mxu1 %v1676_v50  ;;  %v1743_v41 = vld [vmem:[#allocation6 + $0x290] ss:$8 sps:$4 sm:$0xff]   ;;  %v1752_v50 = vld [vmem:[#allocation6 + $0x200] ss:$8 sps:$4 sm:$0xff]  }
  0x91   : > { %626 = vmatprep.subr.bf16.mxu0 %v1648_v43  ;;  %1499 = vmatprep.subr.bf16.mxu1 %v1962_v1  ;;  %v1751_v43 = vld [vmem:[#allocation6 + $0x284] ss:$8 sps:$4 sm:$0xff]  }
  0x94   : > { %627 = vmatpush2.bf16.msra.mxu0 %v1652_v45  ;;  %1500 = vmatpush3.bf16.msra.mxu1 %v1677_v53  ;;  %v1749_v45 = vld [vmem:[#allocation6 + $0x280] ss:$8 sps:$4 sm:$0xff]  }
  0x95   : > { %628 = vmatprep.subr.bf16.mxu0 %v1654_v49  ;;  %1501 = vmatprep.subr.bf16.mxu1 %v1962_v1  ;;  %v1754_v49 = vld [vmem:[#allocation6 + $0x204] ss:$8 sps:$4 sm:$0xff]  }
  0x98   : > { %629 = vmatpush2.bf16.msra.mxu0 %v1658_v51  ;;  %1502 = vmatpush3.bf16.msra.mxu1 %v1678_v56  ;;  %v354_v51 = vlaneseq }
  0x99   : > { %630 = vmatprep.subr.bf16.mxu0 %v1660_v52  ;;  %1503 = vmatprep.subr.bf16.mxu1 %v1962_v1 }
  0x9a   : > { %v2174_v52 = vshrl.u32 %v354_v51, 7 }
  0x9c   : > { %631 = vmatpush2.bf16.msra.mxu0 %v1664_v54  ;;  %1504 = vmatpush3.bf16.msra.mxu1 %v1679_v59  ;;  %v360_v53 = vsub.s32 1, %v2174_v52 }
  0x9d   : > { %632 = vmatprep.subr.bf16.mxu0 %v1666_v55  ;;  %1505 = vmatprep.subr.bf16.mxu1 %v1962_v1  ;;  %v352_v55 = vld [vmem:[#allocation8] sm:$0x3] }
  0x9e   : > { %v361_v56 = vrot.slane %v352_v55, %v360_v53 }
  0xa0   : > { %633 = vmatpush2.bf16.msra.mxu0 %v1670_v57  ;;  %1506 = vmatpush3.bf16.msra.mxu1 %v1680_v3 }
  0xa1   : > { %634 = vmatprep.subr.bf16.mxu0 %v1672_v58  ;;  %1507 = vmatprep.subr.bf16.mxu1 %v1962_v1 }
  0xa4   : > { %635 = vmatpush2.bf16.msra.mxu0 %v1674_v60  ;;  %1508 = vmatpush3.bf16.msra.mxu1 %v1681_v5 }
  0xa5   : > { %1131 = vmatprep.subr.bf16.mxu0 %v1685_v63  ;;  %1509 = vmatprep.subr.bf16.mxu1 %v1962_v1  ;;  %v1700_v1 = vld [vmem:[#allocation6 + $0x1a4] ss:$8 sps:$4 sm:$0xff]  }
  0xa7   : > { %637 = vmatmul.mubr.bf16.vlgmr.msra.gmra.mxu0 %v301_v2 }
  0xa8   : > { %1132 = vmatpush1.bf16.msra.mxu0 %v1683_v4  ;;  %1510 = vmatpush3.bf16.msra.mxu1 %v1682_v6 }
  0xa9   : > { %1133 = vmatprep.subr.bf16.mxu0 %v1688_v8 }
  0xab   : > { %1512 = vmatmul.mubr.bf16.vlgmr.msra.gmra.mxu1 %v303_v46  ;;  %v1740_v46 = vld [vmem:[#allocation6 + $0x220] ss:$8 sps:$4 sm:$0xff]  }
  0xac   : > { %1206 = vmatprep.mubr.bf16.mxu1 %v1961_v0  ;;  %1134 = vmatpush1.bf16.msra.mxu0 %v1686_v7  ;;  %v1709_v0 = vld [vmem:[#allocation6 + $0x2f4] ss:$8 sps:$4 sm:$0xff]  }
  0xad   : > { %1135 = vmatprep.subr.bf16.mxu0 %v1691_v9  ;;  %1174 = vmatprep.subr.bf16.mxu1 %v1709_v0 }
  0xae   : > { %1175 = vmatpush1.bf16.msra.mxu1 %v1707_v17  ;;  %v1420_v17 = vld [vmem:[%s2236_s4] ss:$0 sm:$0xff] }
  0xaf   : > { %1176 = vmatprep.subr.bf16.mxu1 %v1715_v19 }
  0xb0   : > { %1136 = vmatpush1.bf16.msra.mxu0 %v1689_v10 }
  0xb1   : > { %1137 = vmatprep.subr.bf16.mxu0 %v1694_v11 }
  0xb2   : > { %1177 = vmatpush1.bf16.msra.mxu1 %v1713_v21 }
  0xb3   : > { %1178 = vmatprep.subr.bf16.mxu1 %v1721_v23 }
  0xb4   : > { %1138 = vmatpush1.bf16.msra.mxu0 %v1692_v12 }
  0xb5   : > { %1139 = vmatprep.subr.bf16.mxu0 %v1697_v13 }
  0xb6   : > { %1179 = vmatpush1.bf16.msra.mxu1 %v1719_v25 }
  0xb7   : > { %1180 = vmatprep.subr.bf16.mxu1 %v1727_v27 }
  0xb8   : > { %1140 = vmatpush1.bf16.msra.mxu0 %v1695_v14  ;;  %v356_v14 = vsub.s32 0, %v2174_v52 }
  0xb9   : > { %1141 = vmatprep.subr.bf16.mxu0 %v1700_v1 }
  0xba   : > { %1181 = vmatpush1.bf16.msra.mxu1 %v1725_v29  ;;  %v357_v0 = vrot.slane %v352_v55, %v356_v14 }
  0xbb   : > { %1182 = vmatprep.subr.bf16.mxu1 %v1733_v31 }
  0xbc   : > { %1142 = vmatpush1.bf16.msra.mxu0 %v1698_v15 }
  0xbd   : > { %1143 = vmatprep.subr.bf16.mxu0 %v1703_v16 }
  0xbe   : > { %1183 = vmatpush1.bf16.msra.mxu1 %v1731_v33 }
  0xbf   : > { %1184 = vmatprep.subr.bf16.mxu1 %v1739_v35 }
  0xc0   : > { %1144 = vmatpush1.bf16.msra.mxu0 %v1701_v18 }
  0xc1   : > { %1145 = vmatprep.subr.bf16.mxu0 %v1706_v20 }
  0xc2   : > { %1185 = vmatpush1.bf16.msra.mxu1 %v1737_v37  ;;  %v879_v37 = vld [vmem:[#allocation8 + $0x2] sm:$0x3] }
  0xc3   : > { %1186 = vmatprep.subr.bf16.mxu1 %v1745_v39 }
  0xc4   : > { %1146 = vmatpush1.bf16.msra.mxu0 %v1704_v22 }
  0xc5   : > { %1147 = vmatprep.subr.bf16.mxu0 %v1712_v24 }
  0xc6   : > { %1187 = vmatpush1.bf16.msra.mxu1 %v1743_v41 }
  0xc7   : > { %1188 = vmatprep.subr.bf16.mxu1 %v1751_v43 }
  0xc8   : > { %1148 = vmatpush2.bf16.msra.mxu0 %v1710_v26 }
  0xc9   : > { %1149 = vmatprep.subr.bf16.mxu0 %v1718_v28 }
  0xca   : > { %1189 = vmatpush1.bf16.msra.mxu1 %v1749_v45 }
  0xcc   : > { %1150 = vmatpush2.bf16.msra.mxu0 %v1716_v30 }
  0xcd   : > { %1151 = vmatprep.subr.bf16.mxu0 %v1724_v32 }
  0xd0   : > { %1152 = vmatpush2.bf16.msra.mxu0 %v1722_v34 }
  0xd1   : > { %1153 = vmatprep.subr.bf16.mxu0 %v1730_v36 }
  0xd4   : > { %1154 = vmatpush2.bf16.msra.mxu0 %v1728_v38  ;;  %v888_v38 = vrot.slane %v879_v37, %v360_v53 }
  0xd5   : > { %1155 = vmatprep.subr.bf16.mxu0 %v1736_v40 }
  0xd8   : > { %1156 = vmatpush2.bf16.msra.mxu0 %v1734_v42 }
  0xd9   : > { %1157 = vmatprep.subr.bf16.mxu0 %v1742_v44 }
  0xdc   : > { %1158 = vmatpush2.bf16.msra.mxu0 %v1740_v46 }
  0xdd   : > { %1159 = vmatprep.subr.bf16.mxu0 %v1748_v48 }
  0xe0   : > { %1160 = vmatpush2.bf16.msra.mxu0 %v1746_v47 }
  0xe1   : > { %1161 = vmatprep.subr.bf16.mxu0 %v1754_v49 }
  0xe4   : > { %1162 = vmatpush2.bf16.msra.mxu0 %v1752_v50 }
 0x14b   : > { %v681_v54 = vpop.f32.mrf.mxu1 }
 0x14d   : > { %v683_v57 = vpop.f32.mrf.mxu1 }
 0x14f   : > { %v685_v61 = vpop.f32.mrf.mxu1 }
 0x151   : > { %v687_v5 = vpop.f32.mrf.mxu1 }
 0x167   : > { %v638_v58 = vpop.f32.mrf.mxu0 }
 0x168   : > { %v639_v16 = vadd.f32 %v638_v58, %v357_v0 }
 0x169   : > { %v640_v59 = vpop.f32.mrf.mxu0 }
 0x16a   : > { %v641_v60 = vadd.f32 %v640_v59, %v361_v56  ;;  %v682_v18 = vadd.f32 %v681_v54, %v639_v16 }
 0x16b   : > { %v642_v62 = vpop.f32.mrf.mxu0  ;;  %v809_v8 = vpop.f32.mrf.mxu1 }
 0x16c   : > { %v684_v63 = vadd.f32 %v683_v57, %v641_v60  ;;  %v643_v19 = vadd.f32 %v642_v62, %v357_v0  ;;  %v810_v20 = vadd.f32 %v1420_v17, %v809_v8 }
 0x16d   : > { %v644_v2 = vpop.f32.mrf.mxu0  ;;  %v1513_v9 = vpop.f32.mrf.mxu1 }
 0x16e   : > { %v1418_v3 = vmul.f32 -1.442695, %v684_v63  ;;  %v645_v4 = vadd.f32 %v644_v2, %v361_v56  ;;  %v686_v23 = vadd.f32 %v685_v61, %v643_v19  ;;  %v884_v56 = vrot.slane %v879_v37, %v356_v14 }
 0x16f   : > { %v812_v10 = vpop.f32.mrf.mxu1 }
 0x170   : > { %1755 = vpow2.f32 %v1418_v3  ;;  %v688_v6 = vadd.f32 %v687_v5, %v645_v4  ;;  %v813_v27 = vadd.f32 %v1420_v17, %v812_v10 }
 0x171   : > { %v1514_v11 = vpop.f32.mrf.mxu1 }
 0x172   : > { %v1419_v7 = vmul.f32 -1.442695, %v688_v6 }
 0x174   : > { %1757 = vpow2.f32 %v1419_v7 }
 0x17d   : > { %v1756_v12 = vpop.eup %1755 }
 0x17e   : > { %v696_v13 = vadd.f32 1.0, %v1756_v12 }
 0x180   : > { %1759 = vrcp.f32 %v696_v13 }
 0x181   : > { %v1758_v1 = vpop.eup %1757 }
 0x182   : > { %v697_v15 = vadd.f32 1.0, %v1758_v1 }
 0x184   : > { %1761 = vrcp.f32 %v697_v15 }
 0x18d   : > { %v1760_v21 = vpop.eup %1759 }
 0x18e   : > { %v702_v22 = vmul.f32 %v1760_v21, %v682_v18 }
 0x190   : > { %v816_v24 = vadd.f32 %v810_v20, %v702_v22 }
 0x191   : > { %v1762_v25 = vpop.eup %1761 }
 0x192   : > { %818 = vst [vmem:[#allocation2 + $0x4] sm:$0xff] %v816_v24  ;;  %v703_v26 = vmul.f32 %v1762_v25, %v686_v23 }
 0x194   : > { %v817_v28 = vadd.f32 %v813_v27, %v703_v26 }
 0x196   : > { %819 = vst [vmem:[#allocation2 + $0xc] sm:$0xff] %v817_v28  ;;  %v828_v29 = vpack.c.bf16 %v817_v28, %v816_v24 }
 0x198   : > { %1207 = vmatmul.mubr.bf16.vlgmr.msra.gmra.mxu1 %v828_v29 }
 0x199   : > { %v822_v30 = vld [vmem:[#allocation2 + $0x2] sm:$0xff] }
 0x19a   : > { %v820_v32 = vld [vmem:[#allocation2] sm:$0xff] }
 0x19d   : > { %v823_v31 = vld [vmem:[#allocation2 + $0xa] sm:$0xff] }
 0x19e   : > { %v821_v33 = vld [vmem:[#allocation2 + $0x8] sm:$0xff]  ;;  %v827_v34 = vpack.c.bf16 %v823_v31, %v822_v30 }
 0x19f   : > { %v826_v35 = vpack.c.bf16 %v821_v33, %v820_v32 }
 0x1a0   : > { %1163 = vmatprep.mubr.bf16.mxu0 %v827_v34 }
 0x1a1   : > { %1164 = vmatmul.mubr.bf16.vlgmr.msra.gmra.mxu0 %v826_v35 }
 0x258   : > { %v1208_v36 = vpop.f32.mrf.mxu1 }
 0x25a   : > { %v1210_v40 = vpop.f32.mrf.mxu1 }
 0x25c   : > { %v1212_v43 = vpop.f32.mrf.mxu1 }
 0x25e   : > { %v1214_v49 = vpop.f32.mrf.mxu1 }
 0x261   : > { %v1165_v39 = vpop.f32.mrf.mxu0 }
 0x262   : > { %v1166_v57 = vadd.f32 %v1165_v39, %v884_v56 }
 0x263   : > { %v1167_v41 = vpop.f32.mrf.mxu0 }
 0x264   : > { %v1168_v42 = vadd.f32 %v1167_v41, %v888_v38  ;;  %v1209_v58 = vadd.f32 %v1208_v36, %v1166_v57 }
 0x265   : > { %v1169_v44 = vpop.f32.mrf.mxu0 }
 0x266   : > { %v1211_v45 = vadd.f32 %v1210_v40, %v1168_v42  ;;  %v1170_v59 = vadd.f32 %v1169_v44, %v884_v56 }
 0x267   : > { %v1171_v46 = vpop.f32.mrf.mxu0 }
 0x268   : > { %v1477_v47 = vmul.f32 -1.442695, %v1211_v45  ;;  %v1172_v48 = vadd.f32 %v1171_v46, %v888_v38  ;;  %v1213_v63 = vadd.f32 %v1212_v43, %v1170_v59 }
 0x26a   : > { %1763 = vpow2.f32 %v1477_v47  ;;  %v1215_v50 = vadd.f32 %v1214_v49, %v1172_v48 }
 0x26c   : > { %v1478_v51 = vmul.f32 -1.442695, %v1215_v50 }
 0x26e   : > { %1765 = vpow2.f32 %v1478_v51 }
 0x277   : > { %v1764_v52 = vpop.eup %1763 }
 0x278   : > { %v1223_v54 = vadd.f32 1.0, %v1764_v52 }
 0x27a   : > { %1767 = vrcp.f32 %v1223_v54 }
 0x27b   : > { %v1766_v53 = vpop.eup %1765 }
 0x27c   : > { %v1224_v55 = vadd.f32 1.0, %v1766_v53 }
 0x27e   : > { %1769 = vrcp.f32 %v1224_v55 }
 0x287   : > { %v1768_v60 = vpop.eup %1767 }
 0x288   : > { %v1229_v61 = vmul.f32 %v1768_v60, %v1209_v58 }
 0x28a   : > { %v1231_v62 = vadd.f32 %v1229_v61, %v816_v24 }
 0x28b   : > { %v1770_v2 = vpop.eup %1769 }
 0x28c   : > { %1233 = vst [vmem:[#allocation2 + $0x4] sm:$0xff] %v1231_v62  ;;  %v1230_v3 = vmul.f32 %v1770_v2, %v1213_v63  ;;  %1237 = vst [vmem:[%s286_s27] sm:$0xff] %v1231_v62 }
 0x28e   : > { %v1232_v4 = vadd.f32 %v1230_v3, %v817_v28 }
 0x290   : > { %1234 = vst [vmem:[#allocation2 + $0xc] sm:$0xff] %v1232_v4  ;;  %1238 = vst [vmem:[%s286_s27 + $0x8] sm:$0xff] %v1232_v4 }
 0x291   : > { %1890 = shalt.err (!%p1887_p9)
}
 0x292   : > { %s1891_s8 = scalar_lea.hbm %s2187_s23, 256  ;;  %s1895_s24 = scalar_lea.hbm %s2237_s5, 512 }
 0x293   : > { %p1892_p1 = scmp.ne.s32.totalorder %s2187_s23, %s1891_s8  ;;  %p1896_p8 = scmp.lt.s32.totalorder %s2187_s23, %s2237_s5 }
 0x294   : > { %p1897_p3 = scmp.lt.s32.totalorder %s1895_s24, %s1891_s8 }
 0x295   : > { %p1893_p4 = pnand %p1892_p1, %p2256_p12 }
 0x296   : > { %p1898_p11 = por %p1897_p3, %p1896_p8 }
 0x297   : > { %p1894_p6 = pneg %p1893_p4 }
 0x299   : > { %p1899_p7 = pnand %p1898_p11, %p1894_p6 }
 0x29b   : > { %1902 = shalt.err (!%p1899_p7)
}
 0x29c   : > { %s1965_s27 = smov 128   ;;  %s1966_s7 = smov 8  }
 0x29d   : > { %1529 = dma.vmem_to_hbm [thread:$0]  (%p2256_p12), %s2189_s30, 256, %s2187_s23, %s1240_s22, %s1965_s27, %s1965_s27, %s1966_s7  }
 0x29e PF: > { %s1268_s17 = sand.u32 1, %s1937_s18   ;;  %p2257_p13 = scmp.ne.s32.totalorder %s2244_s25, 0 }
 0x29f   : > { %p2258_p0 = scmp.ge.s32.totalorder %s1949_s21, 2  ;;  %s1269_s29 = scalar_lea.sflag [#allocation5], %s1268_s17 }
 0x2a1   : > { %p1546_p10 = pnand %p2258_p0, %p2257_p13 }
 0x2a3   : > { %p1547_p5 = pneg %p1546_p10 }
 0x2a5   : > { %1932 = dma.done.wait (%p1547_p5), %s1269_s29, 256  }
 0x2a6   : > { %1934 = vsyncadd (%p1547_p5), %s1269_s29, 4294967040  ;;  %p20_p2 = scmp.ge.s32.totalorder %s2080_s10, 4   ;;  %s2259_s18 = smov %s1941_s19 }
 0x2a7   : > { %s2260_s19 = smov %s1945_s20  ;;  %s2261_s20 = smov %s2090_s13 }
 0x2a8   : > { %s2262_s21 = smov %s2080_s10  ;;  %22 = sbr.rel (!%p20_p2) target bundleno = 7 (0x7), region = 99 }
 0x2ad   :  { %1274 = vsyncpa [#allocation4], 1 }
 0x2ae   :  { %1276 = vsyncpa [#allocation4 + $0x1], 1 }
 0x2af   :  { %1277 = vsyncpa [#allocation7], 1 }
 0x2b0   :  { %1278 = vsyncpa [#allocation10], 1 }
 0x2b1   :  { %1279 = vsyncpa [#allocation5], 1 }
 0x2b2   :  { %1281 = vsyncpa [#allocation5 + $0x1], 1 }

</bundles_post_ra>
